<compile_context>
chip_gen: v6e
topology: v6e:2x2x1
jax: 0.10.0
libtpu: 0.0.40
codegen_flags: <defaults>
</compile_context>

<pallas_src>
import functools

import jax
import jax.numpy as jnp
from jax.experimental import pallas as pl
from jax.experimental.pallas import tpu as pltpu

_LANE = 128
_SUBLANE_F32 = 8
# Byte budget for ONE input block (Pallas double-buffers it); together with
# the smaller output / mask / scratch buffers this stays well under the
# 32 MiB scoped-VMEM limit requested below on v5e / v6e / v7x alike.
_X_BLOCK_BUDGET = 4 * 1024 * 1024
_VMEM_LIMIT = 32 * 1024 * 1024


def _round_up(x, m):
    return ((x + m - 1) // m) * m


# ----------------------------- kernels ------------------------------------ #

def _sum_kernel(x_ref, o_ref, acc_ref, *, average, r_total, r_tile):
    """Unmasked sum / mean over the middle (reduction) axis."""
    k = pl.program_id(1)

    @pl.when(k == 0)
    def _init():
        acc_ref[...] = jnp.zeros_like(acc_ref)

    x = x_ref[...].astype(jnp.float32)                        # (tm, tr, F)
    if r_total % r_tile != 0:
        # Zero the out-of-bounds tail of the (partial) last reduction block.
        r_ids = jax.lax.broadcasted_iota(
            jnp.int32, (x.shape[0], x.shape[1], 1), dimension=1)
        valid = k * r_tile + r_ids < r_total                  # (tm, tr, 1)
        x = jnp.where(valid, x, 0.0)
    acc_ref[...] += jnp.sum(x, axis=1)                        # (tm, F)

    @pl.when(k == pl.num_programs(1) - 1)
    def _finalize():
        y = acc_ref[...]
        if average:
            y = y / float(r_total)
        o_ref[...] = y.astype(o_ref.dtype)


def _masked_sum_kernel(x_ref, m_ref, o_ref, acc_ref, cnt_ref, *,
                       average, r_total, r_tile):
    """Masked sum / mean over the middle (reduction) axis."""
    k = pl.program_id(1)

    @pl.when(k == 0)
    def _init():
        acc_ref[...] = jnp.zeros_like(acc_ref)
        cnt_ref[...] = jnp.zeros_like(cnt_ref)

    x = x_ref[...].astype(jnp.float32)                        # (tm, tr, F)
    m = m_ref[...].astype(jnp.float32)                        # (tm, tr, 1)
    if r_total % r_tile != 0:
        r_ids = jax.lax.broadcasted_iota(
            jnp.int32, (x.shape[0], x.shape[1], 1), dimension=1)
        valid = k * r_tile + r_ids < r_total                  # (tm, tr, 1)
        x = jnp.where(valid, x, 0.0)   # guard against NaN/Inf garbage * 0
        m = jnp.where(valid, m, 0.0)

    acc_ref[...] += jnp.sum(x * m, axis=1)                    # (tm, F)
    if average:
        cnt_ref[...] += jnp.sum(m, axis=1)                    # (tm, 1)

    @pl.when(k == pl.num_programs(1) - 1)
    def _finalize():
        y = acc_ref[...]
        if average:
            y = y / jnp.maximum(cnt_ref[...], 1.0)
        o_ref[...] = y.astype(o_ref.dtype)


# --------------------------- tiling / dispatch ----------------------------- #

def _choose_tiles(M, R, F, x_itemsize, mask_itemsize=None):
    """Pick (tm, tr) so one x block (+ lane-padded mask block) fits the budget."""
    # TODO(synk): no feature(F)-axis tiling; assumes one 8-row (or 128-chunk)
    # slab of R*F elements fits VMEM (always true for schnetpack-sized tensors).
    sub = _SUBLANE_F32 * max(1, 4 // x_itemsize)   # 8 (f32) / 16 (bf16) / 32 (i8)
    mask_lane_bytes = _LANE * mask_itemsize if mask_itemsize else 0
    row_bytes = max(1, R * (F * x_itemsize + mask_lane_bytes))

    if sub * row_bytes <= _X_BLOCK_BUDGET or R < _LANE:
        # Whole reduction axis per block: single reduction step, grow the row
        # tile as far as the budget (and the array) allows.
        tr = R
        tm = max(sub, (_X_BLOCK_BUDGET // row_bytes) // sub * sub)
        if M <= sub:
            tm = M                                   # tiny: one full block
        else:
            tm = min(tm, (M // sub) * sub)
            # Keep >= 2 row blocks so both v7x TensorCores get work.
            tm = min(tm, max(sub, _round_up(pl.cdiv(M, 2), sub)))
    else:
        # Stream the reduction axis in 128-aligned chunks, accumulate in VMEM.
        tm = M if M <= sub else sub
        per_r_bytes = tm * (F * x_itemsize + mask_lane_bytes)
        tr = max(_LANE, (_X_BLOCK_BUDGET // per_r_bytes) // _LANE * _LANE)
        tr = min(tr, (R // _LANE) * _LANE)
    return tm, tr


def _aggregate_pallas(x3, mask3, *, average, out_dtype):
    """x3: (M, R, F); mask3: (M, R, 1) or None.  Returns (M, F) in out_dtype."""
    M, R, F = x3.shape
    mask_itemsize = mask3.dtype.itemsize if mask3 is not None else None
    tm, tr = _choose_tiles(M, R, F, x3.dtype.itemsize, mask_itemsize)
    grid = (pl.cdiv(M, tm), pl.cdiv(R, tr))

    x_spec = pl.BlockSpec((tm, tr, F), lambda i, k: (i, k, 0))
    out_spec = pl.BlockSpec((tm, F), lambda i, k: (i, 0))
    out_shape = jax.ShapeDtypeStruct((M, F), out_dtype)
    compiler_params = pltpu.CompilerParams(
        dimension_semantics=("parallel", "arbitrary"),
        vmem_limit_bytes=_VMEM_LIMIT,
    )

    if mask3 is None:
        kernel = functools.partial(
            _sum_kernel, average=average, r_total=R, r_tile=tr)
        return pl.pallas_call(
            kernel,
            out_shape=out_shape,
            grid=grid,
            in_specs=[x_spec],
            out_specs=out_spec,
            scratch_shapes=[pltpu.VMEM((tm, F), jnp.float32)],
            compiler_params=compiler_params,
        )(x3)

    m_spec = pl.BlockSpec((tm, tr, 1), lambda i, k: (i, k, 0))
    kernel = functools.partial(
        _masked_sum_kernel, average=average, r_total=R, r_tile=tr)
    return pl.pallas_call(
        kernel,
        out_shape=out_shape,
        grid=grid,
        in_specs=[x_spec, m_spec],
        out_specs=out_spec,
        scratch_shapes=[pltpu.VMEM((tm, F), jnp.float32),
                        pltpu.VMEM((tm, 1), jnp.float32)],
        compiler_params=compiler_params,
    )(x3, mask3)


# --------------------------- module wrapper -------------------------------- #

def _aggregate_reference(x, axis, average, keepdim=True, mask=None):
    """Pure-jnp mirror of the PyTorch forward (fallbacks + correctness check)."""
    if mask is not None:
        x = x * mask[..., None]
    y = jnp.sum(x, axis=axis)
    if average:
        if mask is not None:
            n = jnp.sum(mask, axis=axis, keepdims=keepdim)
            n = jnp.maximum(n, jnp.ones_like(n))
            y = y / n
        else:
            y = y / x.shape[axis]
    return y


class Aggregate:
    """Pallas/JAX equivalent of schnetpack.nn.base.Aggregate.

    Sum or mean pooling along `axis`, with optional neighbor mask.
    (No parameters; nothing to initialize.)
    """

    def __init__(self, axis, mean=False, keepdim=True):
        self.average = bool(mean)
        self.axis = int(axis)
        self.keepdim = bool(keepdim)

    def __call__(self, input, mask=None):
        x = jnp.asarray(input)
        if x.ndim == 0:
            # TODO(synk): 0-d input has no axis to reduce; return as-is.
            return x
        ndim = x.ndim
        axis = self.axis % ndim

        # Degenerate / awkward cases: not worth a Pallas launch.
        if x.size == 0 or ndim < 2 or axis == ndim - 1:
            # TODO(synk): last-axis / 1-d / empty reductions use the jnp path.
            m = None if mask is None else jnp.asarray(mask)
            return _aggregate_reference(x, axis, self.average, self.keepdim, m)

        # Canonicalize to (M, R, F): reduced axis in the middle, feature axis
        # (lane-dense) last.  For axis == ndim-2 this transpose is an identity.
        lead = [d for d in range(ndim) if d not in (axis, ndim - 1)]
        perm = lead + [axis, ndim - 1]
        lead_shape = tuple(x.shape[d] for d in lead)
        R = x.shape[axis]
        F = x.shape[-1]
        M = 1
        for s in lead_shape:
            M *= s
        x3 = jnp.transpose(x, perm).reshape(M, R, F)

        mask3 = None
        out_dtype = x.dtype
        if mask is not None:
            m = jnp.asarray(mask)
            out_dtype = jnp.result_type(x.dtype, m.dtype)
            m = jnp.broadcast_to(m, x.shape[:-1])
            mask3 = jnp.transpose(m, lead + [axis]).reshape(M, R, 1)

        y2 = _aggregate_pallas(x3, mask3, average=self.average,
                               out_dtype=out_dtype)            # (M, F)
        # `lead + [ndim-1]` is already ascending, so a reshape restores the
        # torch output layout (input dims with `axis` removed).
        return y2.reshape(lead_shape + (F,))


if __name__ == "__main__":
    key0 = jax.random.PRNGKey(0)
    k1, k2 = jax.random.split(key0)

    # SchNetPack cfconv-style shapes: (batch, atoms, neighbors, features).
    B, A, Nbr, F = 2, 16, 8, 128
    x = jax.random.normal(k1, (B, A, Nbr, F), dtype=jnp.float32)
    # Neighbor mask (0/1), ~80% ones.
    mask = (jax.random.uniform(k2, (B, A, Nbr)) > 0.2).astype(jnp.float32)

    # 1) Masked mean-pool over the neighbor axis (cfconv aggregation).
    agg_mean = Aggregate(axis=2, mean=True, keepdim=True)
    y_mean = jax.block_until_ready(agg_mean(x, mask))
    ref_mean = _aggregate_reference(x, 2, True, True, mask)
    assert y_mean.shape == (B, A, F) and y_mean.dtype == x.dtype
    assert bool(jnp.allclose(y_mean, ref_mean, atol=1e-5, rtol=1e-5))

    # 2) Plain sum-pool over the atom axis (atomwise readout aggregation).
    agg_sum = Aggregate(axis=1, mean=False)
    y_sum = jax.block_until_ready(agg_sum(x))
    ref_sum = _aggregate_reference(x, 1, False, True, None)
    assert y_sum.shape == (B, Nbr, F) and y_sum.dtype == x.dtype
    assert bool(jnp.allclose(y_sum, ref_sum, atol=1e-4, rtol=1e-5))

    print("KERNEL_OK")
</pallas_src>

<mosaic_0001>
module attributes {stable_mosaic.version = 11 : i64} {
  func.func @_masked_sum_kernel(%arg0: i32, %arg1: i32, %arg2: memref<16x8x128xf32, #tpu.memory_space<vmem>>, %arg3: memref<16x8x1xf32, #tpu.memory_space<vmem>>, %arg4: memref<16x128xf32, #tpu.memory_space<vmem>>, %arg5: memref<16x128xf32, #tpu.memory_space<vmem>>, %arg6: memref<16x1xf32, #tpu.memory_space<vmem>>) attributes {dimension_semantics = [#tpu.dimension_semantics<parallel>, #tpu.dimension_semantics<arbitrary>], iteration_bounds = array<i64: 2, 1>, scalar_prefetch = 0 : i64, scratch_operands = 2 : i64, tpu.core_type = #tpu.core_type<tc>, window_params = [{transform_indices = @transform_0, window_bounds = array<i64: 16, 8, 128>}, {transform_indices = @transform_1, window_bounds = array<i64: 16, 8, 1>}, {transform_indices = @transform_2, window_bounds = array<i64: 16, 128>}]} {
    %c0_i32 = arith.constant 0 : i32
    %0 = arith.cmpi eq, %arg1, %c0_i32 : i32
    %1 = arith.extui %0 : i1 to i32
    %c0_i32_0 = arith.constant 0 : i32
    %2 = arith.cmpi ne, %1, %c0_i32_0 : i32
    scf.if %2 {
      %cst_17 = arith.constant 0.000000e+00 : f32
      %18 = vector.broadcast %cst_17 : f32 to vector<16x128xf32>
      %c0_18 = arith.constant 0 : index
      %c0_19 = arith.constant 0 : index
      %19 = vector.load %arg5[%c0_18, %c0_19] : memref<16x128xf32, #tpu.memory_space<vmem>>, vector<16x128xf32>
      tpu.vector_store %arg5[%c0_18, %c0_19], %18 {strides = array<i32>} : memref<16x128xf32, #tpu.memory_space<vmem>>, vector<16x128xf32>,
      %cst_20 = arith.constant 0.000000e+00 : f32
      %20 = vector.broadcast %cst_20 : f32 to vector<16x1xf32>
      %c0_21 = arith.constant 0 : index
      %c0_22 = arith.constant 0 : index
      %21 = vector.load %arg6[%c0_21, %c0_22] : memref<16x1xf32, #tpu.memory_space<vmem>>, vector<16x1xf32>
      tpu.vector_store %arg6[%c0_21, %c0_22], %20 {strides = array<i32>} : memref<16x1xf32, #tpu.memory_space<vmem>>, vector<16x1xf32>,
    } else {
    }
    %c0 = arith.constant 0 : index
    %c0_1 = arith.constant 0 : index
    %c0_2 = arith.constant 0 : index
    %3 = vector.load %arg2[%c0, %c0_1, %c0_2] : memref<16x8x128xf32, #tpu.memory_space<vmem>>, vector<16x8x128xf32>
    %c0_3 = arith.constant 0 : index
    %c0_4 = arith.constant 0 : index
    %c0_5 = arith.constant 0 : index
    %4 = vector.load %arg3[%c0_3, %c0_4, %c0_5] : memref<16x8x1xf32, #tpu.memory_space<vmem>>, vector<16x8x1xf32>
    %c0_6 = arith.constant 0 : index
    %c0_7 = arith.constant 0 : index
    %5 = vector.load %arg5[%c0_6, %c0_7] : memref<16x128xf32, #tpu.memory_space<vmem>>, vector<16x128xf32>
    %6 = vector.broadcast %4 : vector<16x8x1xf32> to vector<16x8x128xf32>
    %7 = arith.mulf %3, %6 : vector<16x8x128xf32>
    %cst = arith.constant dense<0.000000e+00> : vector<16x128xf32>
    %8 = vector.multi_reduction <add>, %7, %cst [1] : vector<16x8x128xf32> to vector<16x128xf32>
    %9 = arith.addf %5, %8 : vector<16x128xf32>
    %c0_8 = arith.constant 0 : index
    %c0_9 = arith.constant 0 : index
    %10 = vector.load %arg5[%c0_8, %c0_9] : memref<16x128xf32, #tpu.memory_space<vmem>>, vector<16x128xf32>
    tpu.vector_store %arg5[%c0_8, %c0_9], %9 {strides = array<i32>} : memref<16x128xf32, #tpu.memory_space<vmem>>, vector<16x128xf32>,
    %c0_10 = arith.constant 0 : index
    %c0_11 = arith.constant 0 : index
    %11 = vector.load %arg6[%c0_10, %c0_11] : memref<16x1xf32, #tpu.memory_space<vmem>>, vector<16x1xf32>
    %cst_12 = arith.constant dense<0.000000e+00> : vector<16x1xf32>
    %12 = vector.multi_reduction <add>, %4, %cst_12 [1] : vector<16x8x1xf32> to vector<16x1xf32>
    %13 = arith.addf %11, %12 : vector<16x1xf32>
    %c0_13 = arith.constant 0 : index
    %c0_14 = arith.constant 0 : index
    %14 = vector.load %arg6[%c0_13, %c0_14] : memref<16x1xf32, #tpu.memory_space<vmem>>, vector<16x1xf32>
    tpu.vector_store %arg6[%c0_13, %c0_14], %13 {strides = array<i32>} : memref<16x1xf32, #tpu.memory_space<vmem>>, vector<16x1xf32>,
    %c0_i32_15 = arith.constant 0 : i32
    %15 = arith.cmpi eq, %arg1, %c0_i32_15 : i32
    %16 = arith.extui %15 : i1 to i32
    %c0_i32_16 = arith.constant 0 : i32
    %17 = arith.cmpi ne, %16, %c0_i32_16 : i32
    scf.if %17 {
      %c0_17 = arith.constant 0 : index
      %c0_18 = arith.constant 0 : index
      %18 = vector.load %arg5[%c0_17, %c0_18] : memref<16x128xf32, #tpu.memory_space<vmem>>, vector<16x128xf32>
      %c0_19 = arith.constant 0 : index
      %c0_20 = arith.constant 0 : index
      %19 = vector.load %arg6[%c0_19, %c0_20] : memref<16x1xf32, #tpu.memory_space<vmem>>, vector<16x1xf32>
      %cst_21 = arith.constant 1.000000e+00 : f32
      %20 = vector.broadcast %cst_21 : f32 to vector<16x1xf32>
      %21 = arith.maximumf %19, %20 : vector<16x1xf32>
      %22 = vector.broadcast %21 : vector<16x1xf32> to vector<16x128xf32>
      %23 = arith.divf %18, %22 : vector<16x128xf32>
      %c0_22 = arith.constant 0 : index
      %c0_23 = arith.constant 0 : index
      %24 = vector.load %arg4[%c0_22, %c0_23] : memref<16x128xf32, #tpu.memory_space<vmem>>, vector<16x128xf32>
      tpu.vector_store %arg4[%c0_22, %c0_23], %23 {strides = array<i32>} : memref<16x128xf32, #tpu.memory_space<vmem>>, vector<16x128xf32>,
    } else {
    }
    return
  }
  func.func @transform_0(%arg0: i32, %arg1: i32) -> (i32, i32, i32) {
    %c0_i32 = arith.constant 0 : i32
    %c0_i32_0 = arith.constant 0 : i32
    return %arg0, %arg1, %c0_i32 : i32, i32, i32
  }
  func.func @transform_1(%arg0: i32, %arg1: i32) -> (i32, i32, i32) {
    %c0_i32 = arith.constant 0 : i32
    %c0_i32_0 = arith.constant 0 : i32
    return %arg0, %arg1, %c0_i32 : i32, i32, i32
  }
  func.func @transform_2(%arg0: i32, %arg1: i32) -> (i32, i32) {
    %c0_i32 = arith.constant 0 : i32
    %c0_i32_0 = arith.constant 0 : i32
    return %arg0, %c0_i32 : i32, i32
  }
}

</mosaic_0001>

<bundles_post_ra>
// kernel: tpu_custom_call.1
= control target key start
LH: loop header
LB: loop body
LE: loop exit
PB: predicated region body
PF: predicated region fallthrough
CT: control target
= control target key end

     0   :  { %7 = vsyncpa [#allocation5], 0  ;;  %s1147_s0 = inlined_call_operand.vmem [shape: f32[32,8,128], index: 0, kind: input, shape index: {}]   ;;  %s1148_s1 = inlined_call_operand.vmem [shape: f32[32,8,1], index: 1, kind: input, shape index: {}]   ;;  %s1149_s2 = inlined_call_operand.hbm [shape: f32[32,128], index: 2, kind: output, shape index: {}]  }
   0x1   :  { %9 = vsyncpa [#allocation5 + $0x1], 0  ;;  %s936_s9 = smov 0   ;;  %s938_s10 = smov 0  }
   0x2   :  { %s940_s11 = smov 0   ;;  %s942_s12 = smov 0  }
   0x3   :  { %s944_s13 = smov 0   ;;  %s946_s14 = smov 0  }
   0x4 LB: > { %s757_s15 = sadd.s32 4294967295, %s914_s14   ;;  %s758_s16 = sadd.s32 4294967294, %s914_s14   ;;  %s914_s14 = sphi %s946_s14, %s15_s14   ;;  %s910_s13 = sphi %s944_s13, %s1156_s13   ;;  %s906_s12 = sphi %s942_s12, %s1155_s12   ;;  %s902_s11 = sphi %s940_s11, %s1154_s11   ;;  %s898_s10 = sphi %s938_s10, %s1153_s10   ;;  %s894_s9 = sphi %s936_s9, %s1152_s9  }
   0x5   : > { %s27_s17 = sadd.s32 1, %s910_s13  ;;  %s90_s18 = sadd.s32 1, %s902_s11 }
   0x6   : > { %p29_p0 = scmp.ge.s32.totalorder %s27_s17, 2  ;;  %p100_p1 = scmp.ne.s32.totalorder %s902_s11, %s898_s10 }
   0x7   : > { %p101_p2 = scmp.eq.s32.totalorder %s757_s15, 1  ;;  %p106_p3 = scmp.ne.s32.totalorder %s898_s10, %s894_s9 }
   0x8   : > { %s1158_s17 = smov (%p29_p0, %s27_s17), 0  ;;  %p107_p5 = scmp.eq.s32.totalorder %s758_s16, 1 }
   0x9   : > { %p976_p4 = por %p101_p2, %p100_p1  ;;  %s87_s20 = ssub.s32 %s910_s13, %s1158_s17 }
   0xa   : > { %p761_p6 = scmp.ge.s32.totalorder %s914_s14, 1  ;;  %p88_p7 = scmp.eq.s32.totalorder %s87_s20, 0 }
   0xb   : > { %p983_p8 = por %p107_p5, %p106_p3  ;;  %p149_p9 = scmp.lt.s32.totalorder %s914_s14, 3 }
   0xc   : > { %s989_s22 = scalar_select %p88_p7, %s902_s11, %s90_s18  }
   0xd   : > { %p150_p10 = pnand %p761_p6, %p149_p9 }
   0xe   : > { %s763_s23 = sshll.u32 (!%p150_p10), %s906_s12, 4  ;;  %s179_s3 = sand.u32 (!%p150_p10), 1, %s898_s10  }
   0xf   : > { %153 = sbr.rel (%p150_p10) target bundleno = 226 (0xe2), region = 28  ;;  %p183_p11 = scmp.lt.s32.totalorder (!%p150_p10), %s763_s23, 31 }
  0x10   : > { %s762_s4 = sshll.u32 (!%p150_p10), %s179_s3, 4  ;;  %s772_s5 = sshll.u32 (!%p150_p10), %s906_s12, 8 }
  0x11   : > { %s181_s6 = scalar_lea.vmem (!%p150_p10), [#allocation4], %s762_s4  ;;  %s1096_s16 = scalar_lea.hbm (!%p150_p10), %s1149_s2, %s772_s5 }
  0x12   : > { %s669_s7 = sshll.u32 (!%p150_p10), %s181_s6, 4  ;;  %s1102_s12 = scalar_lea.sflag (!%p150_p10), [#allocation5], %s179_s3  ;;  %s1098_s7 = int_to_ptr.vmem [resolvable:$true] %s669_s7 }
  0x13   : > { %s838_s18 = scalar_lea.vmem (!%p150_p10), %s1098_s7, 256  ;;  %s918_s20 = smov (!%p150_p10), [#allocation4]  }
  0x14   : > { %v916_v0 = vmov 0   ;;  %vm207_vm0 = vcmask 7168   ;;  %s1160_s23 = smov (!%p183_p11, %s763_s23), 31  ;;  %v917_v1 = vmov 0.0   ;;  %vm452_vm1 = vcmask 1041409   ;;  %p839_p12 = scmp.ne.s32.totalorder %s1098_s7, %s838_s18 }
  0x15   : > { %833 = vset.pattern.permute.xlu1 %v916_v0  ;;  %832 = vset.pattern.permute.xlu0 %v916_v0  ;;  %209 = vst.msk [vmem:[#allocation3 + $0x8] sm:$0xff] %vm207_vm0, %v917_v1  ;;  %208 = vst.msk [vmem:[#allocation3] sm:$0xff] %vm207_vm0, %v917_v1  ;;  %s764_s24 = sshll.u32 %s1160_s23, 3  ;;  %vm454_vm2 = vcmask 1042434   ;;  %vm456_vm3 = vcmask 1043459   ;;  %vm458_vm4 = vcmask 1044484  }
  0x16   : > { %s1002_s27 = scalar_lea.vmem %s1148_s1, %s764_s24  ;;  %vm460_vm5 = vcmask 1045509   ;;  %vm462_vm6 = vcmask 1046534   ;;  %vm464_vm7 = vcmask 1047559   ;;  %s1057_s30 = scalar_lea.vmem %s1147_s0, %s764_s24 }
  0x17   : > { %v234_v2 = vld [vmem:[%s1002_s27 + $0x40] sm:$0xff]  ;;  %v235_v4 = vld [vmem:[%s1002_s27 + $0x48] sm:$0xff]  ;;  %v236_v9 = vld [vmem:[%s1002_s27 + $0x50] sm:$0xff]  ;;  %p840_p13 = pnand %p839_p12, %p976_p4  ;;  %s842_s23 = sshll.u32 %s918_s20, 4  ;;  %s843_s23 = int_to_ptr.vmem [resolvable:$false] %s842_s23 }
  0x18   : > { %v226_v3 = vld [vmem:[%s1002_s27] sm:$0xff]  ;;  %286 = vperm.xlu1 %833, %v234_v2   ;;  %v538_v5 = vsel %vm207_vm0, %v234_v2, 0.0  ;;  %v545_v7 = vsel %vm207_vm0, %v235_v4, 0.0  ;;  %v227_v8 = vld [vmem:[%s1002_s27 + $0x8] sm:$0xff]  ;;  %v228_v10 = vld [vmem:[%s1002_s27 + $0x10] sm:$0xff]  ;;  %v552_v18 = vsel %vm207_vm0, %v236_v9, 0.0  ;;  %p845_p1 = scmp.lt.s32.totalorder %s1098_s7, %s843_s23 }
  0x19   : > { %246 = vperm.xlu0 %832, %v226_v3   ;;  %v482_v6 = vsel %vm207_vm0, %v226_v3, 0.0  ;;  %v539_v11 = vrot.slane %v538_v5, 4  ;;  %v546_v13 = vrot.slane %v545_v7, 4  ;;  %v489_v14 = vsel %vm207_vm0, %v227_v8, 0.0  ;;  %v237_v15 = vld [vmem:[%s1002_s27 + $0x58] sm:$0xff]  ;;  %v238_v53 = vld [vmem:[%s1002_s27 + $0x60] sm:$0xff]  ;;  %p841_p0 = pneg %p840_p13 }
  0x1a   : > { %v483_v12 = vrot.slane %v482_v6, 4  ;;  %v229_v16 = vld [vmem:[%s1002_s27 + $0x18] sm:$0xff]  ;;  %v490_v17 = vrot.slane %v489_v14, 4  ;;  %v496_v19 = vsel %vm207_vm0, %v228_v10, 0.0  ;;  %v559_v20 = vsel %vm207_vm0, %v237_v15, 0.0  ;;  %v230_v54 = vld [vmem:[%s1002_s27 + $0x20] sm:$0xff] }
  0x1b   : > { %v540_v21 = vadd.f32 %v539_v11, %v538_v5  ;;  %v547_v23 = vadd.f32 %v546_v13, %v545_v7  ;;  %v553_v24 = vrot.slane %v552_v18, 4  ;;  %v497_v26 = vrot.slane %v496_v19, 4  ;;  %v239_v63 = vld [vmem:[%s1002_s27 + $0x68] sm:$0xff]  ;;  %s844_s24 = scalar_lea.vmem %s843_s23, 512 }
  0x1c   : > { %v484_v22 = vadd.f32 %v483_v12, %v482_v6  ;;  %291 = vperm.xlu1 %833, %v235_v4   ;;  %v491_v25 = vadd.f32 %v490_v17, %v489_v14  ;;  %v560_v27 = vrot.slane %v559_v20, 4  ;;  %v503_v28 = vsel %vm207_vm0, %v229_v16, 0.0  ;;  %p846_p2 = scmp.lt.s32.totalorder %s844_s24, %s838_s18 }
  0x1d   : > { %251 = vperm.xlu0 %832, %v227_v8   ;;  %v541_v29 = vrot.slane %v540_v21, 2  ;;  %v548_v31 = vrot.slane %v547_v23, 2  ;;  %v554_v32 = vadd.f32 %v553_v24, %v552_v18  ;;  %v498_v34 = vadd.f32 %v497_v26, %v496_v19  ;;  %v231_v8 = vld [vmem:[%s1002_s27 + $0x28] sm:$0xff]  ;;  %v232_v18 = vld [vmem:[%s1002_s27 + $0x30] sm:$0xff]  ;;  %v241_v19 = vld [vmem:[%s1002_s27 + $0x78] sm:$0xff] }
  0x1e   : > { %v485_v30 = vrot.slane %v484_v22, 2  ;;  %v492_v33 = vrot.slane %v491_v25, 2  ;;  %v561_v35 = vadd.f32 %v560_v27, %v559_v20  ;;  %v504_v36 = vrot.slane %v503_v28, 4  ;;  %p847_p3 = por %p846_p2, %p845_p1 }
  0x1f   : > { %v542_v37 = vadd.f32 %v541_v29, %v540_v21  ;;  %v549_v39 = vadd.f32 %v548_v31, %v547_v23  ;;  %v555_v40 = vrot.slane %v554_v32, 2  ;;  %v499_v42 = vrot.slane %v498_v34, 2 }
  0x20   : > { %v486_v38 = vadd.f32 %v485_v30, %v484_v22  ;;  %v493_v41 = vadd.f32 %v492_v33, %v491_v25  ;;  %296 = vperm.xlu1 %833, %v236_v9   ;;  %v562_v43 = vrot.slane %v561_v35, 2  ;;  %v505_v44 = vadd.f32 %v504_v36, %v503_v28  ;;  %v240_v9 = vld [vmem:[%s1002_s27 + $0x70] sm:$0xff]  ;;  %v233_v28 = vld [vmem:[%s1002_s27 + $0x38] sm:$0xff]  ;;  %p848_p5 = pnand %p847_p3, %p841_p0 }
  0x21   : > { %256 = vperm.xlu0 %832, %v228_v10   ;;  %v543_v45 = vrot.slane %v542_v37, 1  ;;  %v550_v47 = vrot.slane %v549_v39, 1  ;;  %v556_v48 = vadd.f32 %v555_v40, %v554_v32  ;;  %v500_v50 = vadd.f32 %v499_v42, %v498_v34 }
  0x22   : > { %v487_v46 = vrot.slane %v486_v38, 1  ;;  %v494_v49 = vrot.slane %v493_v41, 1  ;;  %v563_v51 = vadd.f32 %v562_v43, %v561_v35  ;;  %v506_v52 = vrot.slane %v505_v44, 2 }
  0x23   : > { %v544_v55 = vadd.f32 %v543_v45, %v542_v37  ;;  %v551_v57 = vadd.f32 %v550_v47, %v549_v39  ;;  %v557_v58 = vrot.slane %v556_v48, 1  ;;  %v501_v60 = vrot.slane %v500_v50, 1 }
  0x24   : > { %v488_v56 = vadd.f32 %v487_v46, %v486_v38  ;;  %v495_v59 = vadd.f32 %v494_v49, %v493_v41  ;;  %v564_v61 = vrot.slane %v563_v51, 1  ;;  %301 = vperm.xlu1 %833, %v237_v15   ;;  %v507_v62 = vadd.f32 %v506_v52, %v505_v44 }
  0x25   : > { %261 = vperm.xlu0 %832, %v229_v16   ;;  %v617_v0 = vsel %vm452_vm1, %v551_v57, %v544_v55  ;;  %v558_v1 = vadd.f32 %v557_v58, %v556_v48  ;;  %v566_v2 = vsel %vm207_vm0, %v238_v53, 0.0  ;;  %v510_v3 = vsel %vm207_vm0, %v230_v54, 0.0 }
  0x26   : > { %v610_v4 = vsel %vm452_vm1, %v495_v59, %v488_v56  ;;  %v502_v5 = vadd.f32 %v501_v60, %v500_v50  ;;  %v565_v6 = vadd.f32 %v564_v61, %v563_v51  ;;  %v508_v7 = vrot.slane %v507_v62, 1 }
  0x27   : > { %v618_v10 = vsel %vm454_vm2, %v558_v1, %v617_v0  ;;  %v567_v11 = vrot.slane %v566_v2, 4  ;;  %v511_v12 = vrot.slane %v510_v3, 4  ;;  %v573_v13 = vsel %vm207_vm0, %v239_v63, 0.0 }
  0x28   : > { %v611_v14 = vsel %vm454_vm2, %v502_v5, %v610_v4  ;;  %v619_v15 = vsel %vm456_vm3, %v565_v6, %v618_v10  ;;  %v509_v16 = vadd.f32 %v508_v7, %v507_v62  ;;  %306 = vperm.xlu1 %833, %v238_v53   ;;  %v574_v17 = vrot.slane %v573_v13, 4  ;;  %v480_v10 = vld [vmem:[#allocation3 + $0x8] sm:$0xff] }
  0x29   : > { %266 = vperm.xlu0 %832, %v230_v54   ;;  %v568_v20 = vadd.f32 %v567_v11, %v566_v2  ;;  %v512_v21 = vadd.f32 %v511_v12, %v510_v3  ;;  %v517_v22 = vsel %vm207_vm0, %v231_v8, 0.0  ;;  %v580_v23 = vsel %vm207_vm0, %v240_v9, 0.0 }
  0x2a   : > { %v612_v24 = vsel %vm456_vm3, %v509_v16, %v611_v14  ;;  %v575_v25 = vadd.f32 %v574_v17, %v573_v13  ;;  %v518_v26 = vrot.slane %v517_v22, 4  ;;  %v581_v27 = vrot.slane %v580_v23, 4 }
  0x2b   : > { %v569_v29 = vrot.slane %v568_v20, 2  ;;  %v513_v30 = vrot.slane %v512_v21, 2  ;;  %v524_v31 = vsel %vm207_vm0, %v232_v18, 0.0  ;;  %v587_v32 = vsel %vm207_vm0, %v241_v19, 0.0 }
  0x2c   : > { %v576_v33 = vrot.slane %v575_v25, 2  ;;  %311 = vperm.xlu1 %833, %v239_v63   ;;  %v519_v34 = vadd.f32 %v518_v26, %v517_v22  ;;  %v582_v35 = vadd.f32 %v581_v27, %v580_v23  ;;  %v525_v36 = vrot.slane %v524_v31, 4 }
  0x2d   : > { %271 = vperm.xlu0 %832, %v231_v8   ;;  %v570_v37 = vadd.f32 %v569_v29, %v568_v20  ;;  %v514_v38 = vadd.f32 %v513_v30, %v512_v21  ;;  %v588_v39 = vrot.slane %v587_v32, 4  ;;  %v531_v40 = vsel %vm207_vm0, %v233_v28, 0.0 }
  0x2e   : > { %v577_v41 = vadd.f32 %v576_v33, %v575_v25  ;;  %v520_v42 = vrot.slane %v519_v34, 2  ;;  %v583_v43 = vrot.slane %v582_v35, 2  ;;  %v526_v44 = vadd.f32 %v525_v36, %v524_v31 }
  0x2f   : > { %v571_v45 = vrot.slane %v570_v37, 1  ;;  %v515_v46 = vrot.slane %v514_v38, 1  ;;  %v589_v47 = vadd.f32 %v588_v39, %v587_v32  ;;  %v532_v48 = vrot.slane %v531_v40, 4  ;;  %v219_v39 = vld [vmem:[%s1057_s30 + $0x48] sm:$0xff] }
  0x30   : > { %v578_v49 = vrot.slane %v577_v41, 1  ;;  %v521_v50 = vadd.f32 %v520_v42, %v519_v34  ;;  %v584_v51 = vadd.f32 %v583_v43, %v582_v35  ;;  %316 = vperm.xlu1 %833, %v240_v9   ;;  %v527_v52 = vrot.slane %v526_v44, 2  ;;  %v218_v34 = vld [vmem:[%s1057_s30 + $0x40] sm:$0xff]  ;;  %v211_v43 = vld [vmem:[%s1057_s30 + $0x8] sm:$0xff] }
  0x31   : > { %276 = vperm.xlu0 %832, %v232_v18   ;;  %v572_v53 = vadd.f32 %v571_v45, %v570_v37  ;;  %v516_v54 = vadd.f32 %v515_v46, %v514_v38  ;;  %v590_v55 = vrot.slane %v589_v47, 2  ;;  %v533_v56 = vadd.f32 %v532_v48, %v531_v40  ;;  %v210_v37 = vld [vmem:[%s1057_s30] sm:$0xff]  ;;  %v220_v40 = vld [vmem:[%s1057_s30 + $0x50] sm:$0xff] }
  0x32   : > { %v579_v57 = vadd.f32 %v578_v49, %v577_v41  ;;  %v522_v58 = vrot.slane %v521_v50, 1  ;;  %v585_v59 = vrot.slane %v584_v51, 1  ;;  %v528_v60 = vadd.f32 %v527_v52, %v526_v44  ;;  %v221_v44 = vld [vmem:[%s1057_s30 + $0x58] sm:$0xff]  ;;  %v222_v48 = vld [vmem:[%s1057_s30 + $0x60] sm:$0xff]  ;;  %v223_v52 = vld [vmem:[%s1057_s30 + $0x68] sm:$0xff] }
  0x33   : > { %v620_v61 = vsel %vm458_vm4, %v572_v53, %v619_v15  ;;  %v613_v62 = vsel %vm458_vm4, %v516_v54, %v612_v24  ;;  %v591_v63 = vadd.f32 %v590_v55, %v589_v47  ;;  %v534_v0 = vrot.slane %v533_v56, 2  ;;  %v479_v15 = vld [vmem:[#allocation3] sm:$0xff]  ;;  %v212_v47 = vld [vmem:[%s1057_s30 + $0x10] sm:$0xff] }
  0x34   : > { %v621_v1 = vsel %vm460_vm5, %v579_v57, %v620_v61  ;;  %v523_v2 = vadd.f32 %v522_v58, %v521_v50  ;;  %v586_v3 = vadd.f32 %v585_v59, %v584_v51  ;;  %v529_v4 = vrot.slane %v528_v60, 1  ;;  %321 = vperm.xlu1 %833, %v241_v19   ;;  %v213_v51 = vld [vmem:[%s1057_s30 + $0x18] sm:$0xff]  ;;  %v214_v55 = vld [vmem:[%s1057_s30 + $0x20] sm:$0xff] }
  0x35   : > { %281 = vperm.xlu0 %832, %v233_v28   ;;  %v592_v5 = vrot.slane %v591_v63, 1  ;;  %v535_v6 = vadd.f32 %v534_v0, %v533_v56  ;;  %v224_v56 = vld [vmem:[%s1057_s30 + $0x70] sm:$0xff] }
  0x36   : > { %v614_v7 = vsel %vm460_vm5, %v523_v2, %v613_v62  ;;  %v622_v8 = vsel %vm462_vm6, %v586_v3, %v621_v1  ;;  %v530_v9 = vadd.f32 %v529_v4, %v528_v60  ;;  %v215_v60 = vld [vmem:[%s1057_s30 + $0x28] sm:$0xff]  ;;  %v225_v62 = vld [vmem:[%s1057_s30 + $0x78] sm:$0xff]  ;;  %v216_v2 = vld [vmem:[%s1057_s30 + $0x30] sm:$0xff] }
  0x37   : > { %v593_v11 = vadd.f32 %v592_v5, %v591_v63  ;;  %v536_v12 = vrot.slane %v535_v6, 1 }
  0x38   : > { %v615_v13 = vsel %vm462_vm6, %v530_v9, %v614_v7 }
  0x39   : > { %v623_v14 = vsel %vm464_vm7, %v593_v11, %v622_v8  ;;  %v537_v16 = vadd.f32 %v536_v12, %v535_v6  ;;  %v217_v8 = vld [vmem:[%s1057_s30 + $0x38] sm:$0xff] }
  0x3a   : > { %v627_v17 = vadd.f32 %v623_v14, %v480_v10 }
  0x3b   : > { %v616_v18 = vsel %vm464_vm7, %v537_v16, %v615_v13 }
  0x3c   : > { %629 = vst.msk [vmem:[#allocation3 + $0x8] sm:$0xff] %vm207_vm0, %v627_v17  ;;  %v626_v19 = vadd.f32 %v616_v18, %v479_v15 }
  0x3e   : > { %628 = vst.msk [vmem:[#allocation3] sm:$0xff] %vm207_vm0, %v626_v19 }
  0x43   : > { %v636_v20 = vld [vmem:[#allocation3 + $0x8] sm:$0xff] }
  0x44   : > { %v638_v21 = vmax.f32 %v636_v20, 1.0 }
  0x45   : > { %v635_v22 = vld [vmem:[#allocation3] sm:$0xff] }
  0x46   : > { %646 = vperm.xlu1 %833, %v638_v21   ;;  %v637_v23 = vmax.f32 %v635_v22, 1.0 }
  0x48   : > { %641 = vperm.xlu0 %832, %v637_v23  }
  0x93   : > { %v287_v24 = vpop.permute.xlu1 %286 }
  0x94   : > { %v247_v25 = vpop.permute.xlu0 %246  ;;  %v332_v38 = vmul.f32 %v287_v24, %v218_v34 }
  0x95   : > { %v324_v42 = vmul.f32 %v247_v25, %v210_v37 }
  0x96   : > { %v388_v49 = vrot.slane %v332_v38, 4 }
  0x97   : > { %v292_v26 = vpop.permute.xlu1 %291  ;;  %v340_v57 = vrot.slane %v324_v42, 4 }
  0x98   : > { %v252_v27 = vpop.permute.xlu0 %251  ;;  %v333_v46 = vmul.f32 %v292_v26, %v219_v39  ;;  %v389_v3 = vadd.f32 %v388_v49, %v332_v38 }
  0x99   : > { %v325_v53 = vmul.f32 %v252_v27, %v211_v43  ;;  %v341_v13 = vadd.f32 %v340_v57, %v324_v42 }
  0x9a   : > { %v394_v63 = vrot.slane %v333_v46, 4  ;;  %v390_v21 = vrot.slane %v389_v3, 2 }
  0x9b   : > { %v297_v28 = vpop.permute.xlu1 %296  ;;  %v346_v9 = vrot.slane %v325_v53, 4 }
  0x9c   : > { %v257_v29 = vpop.permute.xlu0 %256  ;;  %v334_v50 = vmul.f32 %v297_v28, %v220_v40  ;;  %v395_v17 = vadd.f32 %v394_v63, %v333_v46  ;;  %v391_v37 = vadd.f32 %v390_v21, %v389_v3 }
  0x9d   : > { %v326_v58 = vmul.f32 %v257_v29, %v212_v47  ;;  %v347_v25 = vadd.f32 %v346_v9, %v325_v53  ;;  %v342_v29 = vrot.slane %v341_v13, 2 }
  0x9e   : > { %v400_v4 = vrot.slane %v334_v50, 4  ;;  %v392_v53 = vrot.slane %v391_v37, 1 }
  0x9f   : > { %v302_v30 = vpop.permute.xlu1 %301  ;;  %v352_v14 = vrot.slane %v326_v58, 4 }
  0xa0   : > { %v262_v31 = vpop.permute.xlu0 %261  ;;  %v335_v54 = vmul.f32 %v302_v30, %v221_v44  ;;  %v401_v22 = vadd.f32 %v400_v4, %v334_v50  ;;  %v393_v21 = vadd.f32 %v392_v53, %v391_v37 }
  0xa1   : > { %v327_v0 = vmul.f32 %v262_v31, %v213_v51  ;;  %v353_v30 = vadd.f32 %v352_v14, %v326_v58 }
  0xa2   : > { %v406_v10 = vrot.slane %v335_v54, 4  ;;  %v402_v38 = vrot.slane %v401_v22, 2 }
  0xa3   : > { %v307_v32 = vpop.permute.xlu1 %306  ;;  %v358_v18 = vrot.slane %v327_v0, 4  ;;  %v354_v46 = vrot.slane %v353_v30, 2 }
  0xa4   : > { %v267_v33 = vpop.permute.xlu0 %266  ;;  %v336_v59 = vmul.f32 %v307_v32, %v222_v48  ;;  %v407_v26 = vadd.f32 %v406_v10, %v335_v54  ;;  %v403_v54 = vadd.f32 %v402_v38, %v401_v22 }
  0xa5   : > { %v328_v5 = vmul.f32 %v267_v33, %v214_v55  ;;  %v396_v33 = vrot.slane %v395_v17, 2  ;;  %v359_v34 = vadd.f32 %v358_v18, %v327_v0 }
  0xa6   : > { %v412_v15 = vrot.slane %v336_v59, 4  ;;  %v408_v42 = vrot.slane %v407_v26, 2 }
  0xa7   : > { %v312_v35 = vpop.permute.xlu1 %311  ;;  %v364_v23 = vrot.slane %v328_v5, 4  ;;  %v397_v49 = vadd.f32 %v396_v33, %v395_v17  ;;  %v360_v50 = vrot.slane %v359_v34, 2 }
  0xa8   : > { %v272_v36 = vpop.permute.xlu0 %271  ;;  %v337_v1 = vmul.f32 %v312_v35, %v223_v52  ;;  %v413_v31 = vadd.f32 %v412_v15, %v336_v59  ;;  %v409_v58 = vadd.f32 %v408_v42, %v407_v26 }
  0xa9   : > { %v329_v11 = vmul.f32 %v272_v36, %v215_v60  ;;  %v365_v39 = vadd.f32 %v364_v23, %v328_v5 }
  0xaa   : > { %v418_v19 = vrot.slane %v337_v1, 4  ;;  %v414_v47 = vrot.slane %v413_v31, 2  ;;  %v410_v10 = vrot.slane %v409_v58, 1 }
  0xab   : > { %v317_v41 = vpop.permute.xlu1 %316  ;;  %v370_v27 = vrot.slane %v329_v11, 4  ;;  %v366_v55 = vrot.slane %v365_v39, 2 }
  0xac   : > { %v277_v45 = vpop.permute.xlu0 %276  ;;  %v338_v6 = vmul.f32 %v317_v41, %v224_v56  ;;  %v419_v35 = vadd.f32 %v418_v19, %v337_v1  ;;  %v348_v41 = vrot.slane %v347_v25, 2  ;;  %v415_v63 = vadd.f32 %v414_v47, %v413_v31 }
  0xad   : > { %v330_v16 = vmul.f32 %v277_v45, %v216_v2  ;;  %v371_v43 = vadd.f32 %v370_v27, %v329_v11  ;;  %v343_v45 = vadd.f32 %v342_v29, %v341_v13  ;;  %v398_v1 = vrot.slane %v397_v49, 1 }
  0xae   : > { %v424_v24 = vrot.slane %v338_v6, 4  ;;  %v420_v51 = vrot.slane %v419_v35, 2  ;;  %v349_v57 = vadd.f32 %v348_v41, %v347_v25  ;;  %v361_v2 = vadd.f32 %v360_v50, %v359_v34 }
  0xaf   : > { %v322_v61 = vpop.permute.xlu1 %321  ;;  %v376_v32 = vrot.slane %v330_v16, 4  ;;  %v372_v59 = vrot.slane %v371_v43, 2  ;;  %v416_v15 = vrot.slane %v415_v63, 1  ;;  %v399_v17 = vadd.f32 %v398_v1, %v397_v49 }
  0xb0   : > { %v282_v7 = vpop.permute.xlu0 %281  ;;  %v339_v12 = vmul.f32 %v322_v61, %v225_v62  ;;  %v425_v40 = vadd.f32 %v424_v24, %v338_v6  ;;  %v344_v61 = vrot.slane %v343_v45, 1  ;;  %v355_v62 = vadd.f32 %v354_v46, %v353_v30 }
  0xb1   : > { %v331_v20 = vmul.f32 %v282_v7, %v217_v8  ;;  %v377_v48 = vadd.f32 %v376_v32, %v330_v16  ;;  %v421_v3 = vadd.f32 %v420_v51, %v419_v35  ;;  %v404_v6 = vrot.slane %v403_v54, 1 }
  0xb2   : > { %v430_v28 = vrot.slane %v339_v12, 4  ;;  %v426_v56 = vrot.slane %v425_v40, 2  ;;  %v367_v7 = vadd.f32 %v366_v55, %v365_v39  ;;  %v350_v9 = vrot.slane %v349_v57, 1 }
  0xb3   : > { %v382_v36 = vrot.slane %v331_v20, 4  ;;  %v378_v0 = vrot.slane %v377_v48, 2  ;;  %v373_v11 = vadd.f32 %v372_v59, %v371_v43  ;;  %v356_v14 = vrot.slane %v355_v62, 1 }
  0xb4   : > { %v431_v44 = vadd.f32 %v430_v28, %v339_v12  ;;  %v427_v8 = vadd.f32 %v426_v56, %v425_v40  ;;  %v362_v18 = vrot.slane %v361_v2, 1  ;;  %v422_v19 = vrot.slane %v421_v3, 1 }
  0xb5   : > { %v383_v52 = vadd.f32 %v382_v36, %v331_v20  ;;  %v379_v16 = vadd.f32 %v378_v0, %v377_v48  ;;  %v405_v22 = vadd.f32 %v404_v6, %v403_v54  ;;  %v368_v23 = vrot.slane %v367_v7, 1 }
  0xb6   : > { %v432_v60 = vrot.slane %v431_v44, 2  ;;  %v428_v24 = vrot.slane %v427_v8, 1  ;;  %v351_v25 = vadd.f32 %v350_v9, %v349_v57  ;;  %v411_v26 = vadd.f32 %v410_v10, %v409_v58 }
  0xb7   : > { %v384_v4 = vrot.slane %v383_v52, 2  ;;  %v374_v27 = vrot.slane %v373_v11, 1  ;;  %v345_v29 = vadd.f32 %v344_v61, %v343_v45  ;;  %v357_v30 = vadd.f32 %v356_v14, %v355_v62 }
  0xb8   : > { %v433_v12 = vadd.f32 %v432_v60, %v431_v44  ;;  %v417_v31 = vadd.f32 %v416_v15, %v415_v63  ;;  %v380_v32 = vrot.slane %v379_v16, 1  ;;  %v466_v33 = vsel %vm452_vm1, %v399_v17, %v393_v21 }
  0xb9   : > { %v385_v20 = vadd.f32 %v384_v4, %v383_v52  ;;  %v363_v34 = vadd.f32 %v362_v18, %v361_v2  ;;  %v423_v35 = vadd.f32 %v422_v19, %v421_v3  ;;  %v467_v37 = vsel %vm454_vm2, %v405_v22, %v466_v33 }
  0xba   : > { %v434_v28 = vrot.slane %v433_v12, 1  ;;  %v369_v38 = vadd.f32 %v368_v23, %v367_v7  ;;  %v429_v39 = vadd.f32 %v428_v24, %v427_v8  ;;  %v453_v40 = vsel %vm452_vm1, %v351_v25, %v345_v29 }
  0xbb   : > { %v386_v36 = vrot.slane %v385_v20, 1  ;;  %v468_v41 = vsel %vm456_vm3, %v411_v26, %v467_v37  ;;  %v375_v42 = vadd.f32 %v374_v27, %v373_v11  ;;  %v455_v44 = vsel %vm454_vm2, %v357_v30, %v453_v40 }
  0xbc   : > { %v435_v43 = vadd.f32 %v434_v28, %v433_v12  ;;  %v469_v45 = vsel %vm458_vm4, %v417_v31, %v468_v41  ;;  %v381_v46 = vadd.f32 %v380_v32, %v379_v16  ;;  %v457_v47 = vsel %vm456_vm3, %v363_v34, %v455_v44 }
  0xbd   : > { %v470_v48 = vsel %vm460_vm5, %v423_v35, %v469_v45  ;;  %v387_v49 = vadd.f32 %v386_v36, %v385_v20  ;;  %v459_v50 = vsel %vm458_vm4, %v369_v38, %v457_v47 }
  0xbe   : > { %v471_v51 = vsel %vm462_vm6, %v429_v39, %v470_v48  ;;  %v461_v53 = vsel %vm460_vm5, %v375_v42, %v459_v50 }
  0xbf   : > { %v472_v54 = vsel %vm464_vm7, %v435_v43, %v471_v51  ;;  %v463_v55 = vsel %vm462_vm6, %v381_v46, %v461_v53 }
  0xc0   : > { %v465_v58 = vsel %vm464_vm7, %v387_v49, %v463_v55 }
  0xc1   : > { %v647_v5 = vpop.permute.xlu1 %646 }
  0xc2   : > { %834 = vrcp.f32 %v647_v5 }
  0xc3   : > { %v642_v13 = vpop.permute.xlu0 %641 }
  0xc4   : > { %836 = vrcp.f32 %v642_v13 }
  0xcf   : > { %v835_v52 = vpop.eup %834 }
  0xd0   : > { %v652_v56 = vmul.f32 %v835_v52, %v472_v54 }
  0xd1   : > { %v837_v57 = vpop.eup %836 }
  0xd2   : > { %v650_v59 = vmul.f32 %v837_v57, %v465_v58  ;;  %654 = vst [vmem:[%s181_s6 + $0x8] sm:$0xff] %v652_v56 }
  0xd4   : > { %653 = vst [vmem:[%s181_s6] sm:$0xff] %v650_v59 }
  0xd5   : > { %851 = shalt.err (!%p848_p5)
}
  0xd6   : > { %s852_s25 = scalar_lea.hbm %s1096_s16, 256  ;;  %s856_s28 = scalar_lea.hbm %s1149_s2, 512 }
  0xd7   : > { %p853_p6 = scmp.ne.s32.totalorder %s1096_s16, %s852_s25  ;;  %p857_p10 = scmp.lt.s32.totalorder %s1096_s16, %s1149_s2 }
  0xd8   : > { %p858_p11 = scmp.lt.s32.totalorder %s856_s28, %s852_s25 }
  0xd9   : > { %p854_p7 = pnand %p853_p6, %p976_p4 }
  0xda   : > { %p859_p12 = por %p858_p11, %p857_p10 }
  0xdb   : > { %p855_p9 = pneg %p854_p7 }
  0xdd   : > { %p860_p13 = pnand %p859_p12, %p855_p9 }
  0xdf   : > { %863 = shalt.err (!%p860_p13)
}
  0xe0   : > { %s919_s3 = smov 128   ;;  %s920_s4 = smov 8  }
  0xe1   : > { %773 = dma.vmem_to_hbm [thread:$0]  (%p976_p4), %s1098_s7, 256, %s1096_s16, %s1102_s12, %s919_s3, %s919_s3, %s920_s4  }
  0xe2 PF: > { %p779_p0 = scmp.ge.s32.totalorder %s914_s14, 2  ;;  %s684_s5 = sand.u32 1, %s894_s9  }
  0xe3   : > { %s685_s6 = scalar_lea.sflag [#allocation5], %s684_s5 }
  0xe4   : > { %p776_p1 = pnand %p779_p0, %p983_p8 }
  0xe6   : > { %p777_p2 = pneg %p776_p1 }
  0xe8   : > { %889 = dma.done.wait (%p777_p2), %s685_s6, 256  }
  0xe9   : > { %891 = vsyncadd (%p777_p2), %s685_s6, 4294967040  ;;  %s15_s14 = sadd.s32 1, %s914_s14   ;;  %s1152_s9 = smov %s898_s10 }
  0xea   : > { %p12_p3 = scmp.ge.s32.totalorder %s15_s14, 4   ;;  %s1153_s10 = smov %s902_s11 }
  0xeb   : > { %s1154_s11 = smov %s989_s22  ;;  %s1155_s12 = smov %s910_s13 }
  0xec   : > { %s1156_s13 = smov %s1158_s17  ;;  %14 = sbr.rel (!%p12_p3) target bundleno = 4 (0x4), region = 74 }
  0xf1   :  { %690 = vsyncpa [#allocation5], 1 }
  0xf2   :  { %692 = vsyncpa [#allocation5 + $0x1], 1 }

</bundles_post_ra>
